<compile_context>
chip_gen: v7x
topology: tpu7x:2x2x1
jax: 0.10.0
libtpu: 0.0.40
codegen_flags: <defaults>
</compile_context>

<pallas_src>
import math

import jax
import jax.numpy as jnp
from jax.experimental import pallas as pl
from jax.experimental.pallas import tpu as pltpu

BN_EPS = 1e-5                      # PyTorch BatchNorm2d default eps
BN_BLOCK_BYTES = 4 * 1024 * 1024   # target bf16 block size for the BN kernel


def _vmem_limit_bytes():
    """Generation-aware scoped-VMEM limit (v5e/v6e: 128 MiB, v7x: 64 MiB)."""
    try:
        cap = pltpu.get_tpu_info().vmem_capacity_bytes
        return int(max(32 * 1024 * 1024,
                       min(cap - 16 * 1024 * 1024, 96 * 1024 * 1024)))
    except Exception:
        return 48 * 1024 * 1024    # safe on every generation


def _make_conv_stats_kernel(ke, OH, OW, Ce, Cout):
    """Direct stride-1 'valid' conv for one sample + per-sample BN statistics.

    x_ref:   (1, HIN, WIN, Ce)   bf16  padded sample (VMEM, one DMA per step)
    w_ref:   (ke*ke, Ce, Cout)   bf16  weights (VMEM-resident, constant index)
    y_ref:   (1, OH, OW, Cout)   bf16  conv output
    sum_ref: (1, 8, Cout)        f32   per-sample channel sum   (row-replicated)
    ssq_ref: (1, 8, Cout)        f32   per-sample channel sum^2 (row-replicated)
    acc_ref: (OH, OW, Cout)      f32   accumulator scratch
    """

    def kernel(x_ref, w_ref, y_ref, sum_ref, ssq_ref, acc_ref):
        def row_body(oh, carry):
            racc = jnp.zeros((OW, Cout), jnp.float32)
            for i in range(ke):           # tap rows  (static unroll, ke small)
                for j in range(ke):       # tap cols
                    lhs = x_ref[0, oh + i, pl.ds(j, OW), :]          # (OW, Ce)
                    racc = racc + jnp.dot(lhs, w_ref[i * ke + j],
                                          preferred_element_type=jnp.float32)
            acc_ref[oh] = racc
            return carry

        jax.lax.fori_loop(0, OH, row_body, 0)

        acc = acc_ref[...]                                   # (OH, OW, Cout) f32
        y_ref[0] = acc.astype(y_ref.dtype)                   # bf16 activation out
        s = jnp.sum(acc, axis=(0, 1)).reshape(1, 1, Cout)    # f32 stats pre-downcast
        ss = jnp.sum(acc * acc, axis=(0, 1)).reshape(1, 1, Cout)
        sum_ref[...] = jnp.broadcast_to(s, sum_ref.shape)
        ssq_ref[...] = jnp.broadcast_to(ss, ssq_ref.shape)

    return kernel


def _bn_relu_kernel(y_ref, scale_ref, shift_ref, o_ref):
    """BatchNorm apply + ReLU: bf16 in/out, f32 arithmetic."""
    y = y_ref[...].astype(jnp.float32)
    z = y * scale_ref[...] + shift_ref[...]        # (1,Cout) broadcasts over lanes
    o_ref[...] = jnp.maximum(z, 0.0).astype(o_ref.dtype)


def conv_bn_relu(x, w, gamma, beta, *, k, stride, pad):
    """Conv2d(kxk, stride, pad) + train-mode BN + ReLU.

    x: (N, H, W, Cin) bf16 NHWC.  w: (k, k, Cin, Cout) f32.
    Returns (N, OH, OW, Cout) bf16.
    """
    N, H, W, Cin = x.shape
    Cout = w.shape[-1]
    s = stride
    OH = (H + 2 * pad - k) // s + 1
    OW = (W + 2 * pad - k) // s + 1
    ke = -(-k // s)                     # effective kernel after space-to-depth
    HIN = OH + ke - 1
    WIN = OW + ke - 1

    # ---- build stride-1 "valid" conv operands (no k^2 im2col inflation) ----
    pad_b = max(0, HIN * s - H - pad)
    pad_r = max(0, WIN * s - W - pad)
    xp = jnp.pad(x, ((0, 0), (pad, pad_b), (pad, pad_r), (0, 0)))
    xp = xp[:, : HIN * s, : WIN * s, :]
    if s > 1:
        # space-to-depth: stride-s kxk conv == stride-1 ke x ke conv over s*s*Cin
        xp = (xp.reshape(N, HIN, s, WIN, s, Cin)
                .transpose(0, 1, 3, 2, 4, 5)
                .reshape(N, HIN, WIN, s * s * Cin))
        wpad = jnp.pad(w, ((0, ke * s - k), (0, ke * s - k), (0, 0), (0, 0)))
        we = (wpad.reshape(ke, s, ke, s, Cin, Cout)
                  .transpose(0, 2, 1, 3, 4, 5)
                  .reshape(ke * ke, s * s * Cin, Cout))
    else:
        we = w.reshape(k * k, Cin, Cout)
    Ce = xp.shape[-1]

    # Lane-align the contraction dim (zero-padding contributes exactly 0).
    if Ce % 128 != 0:
        pc = 128 - Ce % 128
        xp = jnp.pad(xp, ((0, 0), (0, 0), (0, 0), (0, pc)))
        we = jnp.pad(we, ((0, 0), (0, pc), (0, 0)))
        Ce += pc

    xp = xp.astype(jnp.bfloat16)
    we = we.astype(jnp.bfloat16)
    vmem_limit = _vmem_limit_bytes()

    # ---- kernel 1: direct conv + per-sample channel statistics ----
    y, psum, pssq = pl.pallas_call(
        _make_conv_stats_kernel(ke, OH, OW, Ce, Cout),
        out_shape=(
            jax.ShapeDtypeStruct((N, OH, OW, Cout), jnp.bfloat16),
            jax.ShapeDtypeStruct((N, 8, Cout), jnp.float32),
            jax.ShapeDtypeStruct((N, 8, Cout), jnp.float32),
        ),
        grid_spec=pltpu.PrefetchScalarGridSpec(
            num_scalar_prefetch=0,
            grid=(N,),
            in_specs=[
                pl.BlockSpec((1, HIN, WIN, Ce), lambda n: (n, 0, 0, 0)),
                pl.BlockSpec((ke * ke, Ce, Cout), lambda n: (0, 0, 0)),  # resident
            ],
            out_specs=[
                pl.BlockSpec((1, OH, OW, Cout), lambda n: (n, 0, 0, 0)),
                pl.BlockSpec((1, 8, Cout), lambda n: (n, 0, 0)),
                pl.BlockSpec((1, 8, Cout), lambda n: (n, 0, 0)),
            ],
            scratch_shapes=[pltpu.VMEM((OH, OW, Cout), jnp.float32)],
        ),
        compiler_params=pltpu.CompilerParams(
            dimension_semantics=("parallel",),
            vmem_limit_bytes=vmem_limit,
        ),
        cost_estimate=pl.CostEstimate(
            flops=2 * N * OH * OW * ke * ke * Ce * Cout,
            transcendentals=0,
            bytes_accessed=(N * HIN * WIN * Ce * 2 + ke * ke * Ce * Cout * 2
                            + N * OH * OW * Cout * 2 + 2 * N * 8 * Cout * 4),
        ),
    )(xp, we)

    # ---- finalize train-mode BatchNorm batch statistics (f32) ----
    m_rows = N * OH * OW
    total_sum = jnp.sum(psum[:, 0, :], axis=0)
    total_ssq = jnp.sum(pssq[:, 0, :], axis=0)
    mean = total_sum / m_rows
    var = jnp.maximum(total_ssq / m_rows - mean * mean, 0.0)   # biased, train-mode
    scale = gamma * jax.lax.rsqrt(var + BN_EPS)
    shift = beta - mean * scale

    # ---- kernel 2: BN apply + ReLU over multi-sample lane-dense blocks ----
    per_sample = OH * OW * Cout * 2
    nb = 1
    for d in range(N, 0, -1):
        if N % d == 0 and d * per_sample <= BN_BLOCK_BYTES:
            nb = d
            break

    out = pl.pallas_call(
        _bn_relu_kernel,
        out_shape=jax.ShapeDtypeStruct((N, OH, OW, Cout), jnp.bfloat16),
        grid_spec=pltpu.PrefetchScalarGridSpec(
            num_scalar_prefetch=0,
            grid=(N // nb,),
            in_specs=[
                pl.BlockSpec((nb, OH, OW, Cout), lambda n: (n, 0, 0, 0)),
                pl.BlockSpec((1, Cout), lambda n: (0, 0)),
                pl.BlockSpec((1, Cout), lambda n: (0, 0)),
            ],
            out_specs=pl.BlockSpec((nb, OH, OW, Cout), lambda n: (n, 0, 0, 0)),
        ),
        compiler_params=pltpu.CompilerParams(
            dimension_semantics=("parallel",),
            vmem_limit_bytes=vmem_limit,
        ),
        cost_estimate=pl.CostEstimate(
            flops=2 * N * OH * OW * Cout,
            transcendentals=0,
            bytes_accessed=2 * N * OH * OW * Cout * 2 + 2 * Cout * 4,
        ),
    )(y, scale.reshape(1, Cout).astype(jnp.float32),
      shift.reshape(1, Cout).astype(jnp.float32))

    return out


class CNNProcessorPallas:
    """Pallas/JAX port of the PyTorch CNNProcessor module (train-mode forward)."""

    def __init__(self, num_patches, input_channels=768, output_size=26, key=None):
        self.output_size = output_size
        self.num_patches = num_patches
        height = int((num_patches + 1) ** 0.5)
        stride = max(1, (height + output_size - 1) // output_size)

        # (cin, cout, kernel, stride, pad) for conv1..conv4
        cfg = [
            (input_channels, 256, 5, stride, 2),
            (256, 128, 3, 1, 1),
            (128, 128, 3, 1, 1),
            (128, 128, 3, 1, 1),
        ]

        if key is None:
            key = jax.random.PRNGKey(0)
        self.layers = []
        for (cin, cout, kk, s, p) in cfg:
            key, kw_ = jax.random.split(key)
            fan_in = kk * kk * cin
            # Deterministic synthetic init (Kaiming-like), (kh, kw, cin, cout).
            w = jax.random.normal(kw_, (kk, kk, cin, cout), jnp.float32) \
                * math.sqrt(2.0 / fan_in)
            # NOTE: the Conv2d bias cancels exactly under train-mode BN
            # (batch-mean subtraction), so it is not materialized here.
            gamma = jnp.ones((cout,), jnp.float32)   # PyTorch BN init
            beta = jnp.zeros((cout,), jnp.float32)
            self.layers.append((w, gamma, beta, kk, s, p))

    def __call__(self, x_nchw):
        # NCHW (PyTorch) -> NHWC (internal), bf16 activations end-to-end.
        x = jnp.transpose(x_nchw, (0, 2, 3, 1)).astype(jnp.bfloat16)
        for (w, gamma, beta, kk, s, p) in self.layers:
            x = conv_bn_relu(x, w, gamma, beta, k=kk, stride=s, pad=p)

        cur_h, cur_w = x.shape[1], x.shape[2]
        if cur_h != self.output_size or cur_w != self.output_size:
            pad_h = max(0, self.output_size - cur_h)
            pad_w = max(0, self.output_size - cur_w)
            if pad_h > 0 or pad_w > 0:
                # F.pad(..., mode='replicate') on right/bottom only
                x = jnp.pad(x, ((0, 0), (0, pad_h), (0, pad_w), (0, 0)), mode="edge")
            x = x[:, : self.output_size, : self.output_size, :]

        # NHWC -> NCHW, f32 to match the PyTorch output convention.
        return jnp.transpose(x, (0, 3, 1, 2)).astype(jnp.float32)


if __name__ == "__main__":
    # Small, consistent shapes:
    #   num_patches = 63 -> height = int(sqrt(64)) = 8
    #   output_size = 5  -> conv1 stride = max(1, (8+5-1)//5) = 2
    #   conv1: 8x8 -> 4x4 ; conv2..4 keep 4x4 ; final replicate-pad -> 5x5
    NUM_PATCHES = 63
    IN_CH = 8
    OUT_SIZE = 5
    BATCH = 2
    HEIGHT = int((NUM_PATCHES + 1) ** 0.5)

    key = jax.random.PRNGKey(0)
    kx, kparams = jax.random.split(key)
    x = jax.random.normal(kx, (BATCH, IN_CH, HEIGHT, HEIGHT), jnp.float32)  # NCHW

    model = CNNProcessorPallas(NUM_PATCHES, input_channels=IN_CH,
                               output_size=OUT_SIZE, key=kparams)
    out = jax.block_until_ready(model(x))

    assert out.shape == (BATCH, 128, OUT_SIZE, OUT_SIZE), out.shape
    assert bool(jnp.all(jnp.isfinite(out)))
    assert bool(jnp.all(out >= 0.0))  # ReLU output
    print("KERNEL_OK")
</pallas_src>

<mosaic_0001>
module attributes {stable_mosaic.version = 11 : i64} {
  func.func @kernel(%arg0: i32, %arg1: memref<1x6x6x128xbf16, #tpu.memory_space<vmem>>, %arg2: memref<9x128x256xbf16, #tpu.memory_space<vmem>>, %arg3: memref<1x4x4x256xbf16, #tpu.memory_space<vmem>>, %arg4: memref<1x8x256xf32, #tpu.memory_space<vmem>>, %arg5: memref<1x8x256xf32, #tpu.memory_space<vmem>>, %arg6: memref<4x4x256xf32, #tpu.memory_space<vmem>>) attributes {dimension_semantics = [#tpu.dimension_semantics<parallel>], iteration_bounds = array<i64: 2>, scalar_prefetch = 0 : i64, scratch_operands = 1 : i64, tpu.core_type = #tpu.core_type<tc>, window_params = [{transform_indices = @transform_0, window_bounds = array<i64: 1, 6, 6, 128>}, {pipeline_mode = #tpu.pipeline_mode<synchronous>, transform_indices = @transform_1, window_bounds = array<i64: 9, 128, 256>}, {transform_indices = @transform_2, window_bounds = array<i64: 1, 4, 4, 256>}, {transform_indices = @transform_3, window_bounds = array<i64: 1, 8, 256>}, {transform_indices = @transform_4, window_bounds = array<i64: 1, 8, 256>}]} {
    %c0_i32 = arith.constant 0 : i32
    %c4_i32 = arith.constant 4 : i32
    %0 = arith.addi %c0_i32, %c4_i32 : i32
    %c1_i32 = arith.constant 1 : i32
    scf.for %arg7 = %c0_i32 to %0 step %c1_i32  : i32 {
      %cst_14 = arith.constant 0.000000e+00 : f32
      %17 = vector.broadcast %cst_14 : f32 to vector<4x256xf32>
      %c0_i32_15 = arith.constant 0 : i32
      %18 = arith.addi %arg7, %c0_i32_15 : i32
      %c0_16 = arith.constant 0 : index
      %19 = arith.index_cast %18 : i32 to index
      %c0_17 = arith.constant 0 : index
      %c0_18 = arith.constant 0 : index
      %20 = vector.load %arg1[%c0_16, %19, %c0_17, %c0_18] : memref<1x6x6x128xbf16, #tpu.memory_space<vmem>>, vector<1x1x4x128xbf16>
      %21 = vector.shape_cast %20 : vector<1x1x4x128xbf16> to vector<4x128xbf16>
      %c0_19 = arith.constant 0 : index
      %c0_20 = arith.constant 0 : index
      %c0_21 = arith.constant 0 : index
      %22 = vector.load %arg2[%c0_19, %c0_20, %c0_21] : memref<9x128x256xbf16, #tpu.memory_space<vmem>>, vector<1x128x256xbf16>
      %23 = vector.shape_cast %22 : vector<1x128x256xbf16> to vector<128x256xbf16>
      %cst_22 = arith.constant dense<0.000000e+00> : vector<4x256xf32>
      %24 = tpu.matmul %21, %23, %cst_22 {dimension_numbers = #tpu.dot_dimension_numbers<[1], [0], [0], [1], [0, 0, 1, 1], [], []>} : vector<4x128xbf16>, vector<128x256xbf16>, vector<4x256xf32> -> vector<4x256xf32>
      %25 = arith.addf %17, %24 : vector<4x256xf32>
      %c0_i32_23 = arith.constant 0 : i32
      %26 = arith.addi %arg7, %c0_i32_23 : i32
      %c0_24 = arith.constant 0 : index
      %27 = arith.index_cast %26 : i32 to index
      %c1 = arith.constant 1 : index
      %c0_25 = arith.constant 0 : index
      %28 = vector.load %arg1[%c0_24, %27, %c1, %c0_25] : memref<1x6x6x128xbf16, #tpu.memory_space<vmem>>, vector<1x1x4x128xbf16>
      %29 = vector.shape_cast %28 : vector<1x1x4x128xbf16> to vector<4x128xbf16>
      %c1_26 = arith.constant 1 : index
      %c0_27 = arith.constant 0 : index
      %c0_28 = arith.constant 0 : index
      %30 = vector.load %arg2[%c1_26, %c0_27, %c0_28] : memref<9x128x256xbf16, #tpu.memory_space<vmem>>, vector<1x128x256xbf16>
      %31 = vector.shape_cast %30 : vector<1x128x256xbf16> to vector<128x256xbf16>
      %cst_29 = arith.constant dense<0.000000e+00> : vector<4x256xf32>
      %32 = tpu.matmul %29, %31, %cst_29 {dimension_numbers = #tpu.dot_dimension_numbers<[1], [0], [0], [1], [0, 0, 1, 1], [], []>} : vector<4x128xbf16>, vector<128x256xbf16>, vector<4x256xf32> -> vector<4x256xf32>
      %33 = arith.addf %25, %32 : vector<4x256xf32>
      %c0_i32_30 = arith.constant 0 : i32
      %34 = arith.addi %arg7, %c0_i32_30 : i32
      %c0_31 = arith.constant 0 : index
      %35 = arith.index_cast %34 : i32 to index
      %c2 = arith.constant 2 : index
      %c0_32 = arith.constant 0 : index
      %36 = vector.load %arg1[%c0_31, %35, %c2, %c0_32] : memref<1x6x6x128xbf16, #tpu.memory_space<vmem>>, vector<1x1x4x128xbf16>
      %37 = vector.shape_cast %36 : vector<1x1x4x128xbf16> to vector<4x128xbf16>
      %c2_33 = arith.constant 2 : index
      %c0_34 = arith.constant 0 : index
      %c0_35 = arith.constant 0 : index
      %38 = vector.load %arg2[%c2_33, %c0_34, %c0_35] : memref<9x128x256xbf16, #tpu.memory_space<vmem>>, vector<1x128x256xbf16>
      %39 = vector.shape_cast %38 : vector<1x128x256xbf16> to vector<128x256xbf16>
      %cst_36 = arith.constant dense<0.000000e+00> : vector<4x256xf32>
      %40 = tpu.matmul %37, %39, %cst_36 {dimension_numbers = #tpu.dot_dimension_numbers<[1], [0], [0], [1], [0, 0, 1, 1], [], []>} : vector<4x128xbf16>, vector<128x256xbf16>, vector<4x256xf32> -> vector<4x256xf32>
      %41 = arith.addf %33, %40 : vector<4x256xf32>
      %c1_i32_37 = arith.constant 1 : i32
      %42 = arith.addi %arg7, %c1_i32_37 : i32
      %c0_38 = arith.constant 0 : index
      %43 = arith.index_cast %42 : i32 to index
      %c0_39 = arith.constant 0 : index
      %c0_40 = arith.constant 0 : index
      %44 = vector.load %arg1[%c0_38, %43, %c0_39, %c0_40] : memref<1x6x6x128xbf16, #tpu.memory_space<vmem>>, vector<1x1x4x128xbf16>
      %45 = vector.shape_cast %44 : vector<1x1x4x128xbf16> to vector<4x128xbf16>
      %c3 = arith.constant 3 : index
      %c0_41 = arith.constant 0 : index
      %c0_42 = arith.constant 0 : index
      %46 = vector.load %arg2[%c3, %c0_41, %c0_42] : memref<9x128x256xbf16, #tpu.memory_space<vmem>>, vector<1x128x256xbf16>
      %47 = vector.shape_cast %46 : vector<1x128x256xbf16> to vector<128x256xbf16>
      %cst_43 = arith.constant dense<0.000000e+00> : vector<4x256xf32>
      %48 = tpu.matmul %45, %47, %cst_43 {dimension_numbers = #tpu.dot_dimension_numbers<[1], [0], [0], [1], [0, 0, 1, 1], [], []>} : vector<4x128xbf16>, vector<128x256xbf16>, vector<4x256xf32> -> vector<4x256xf32>
      %49 = arith.addf %41, %48 : vector<4x256xf32>
      %c1_i32_44 = arith.constant 1 : i32
      %50 = arith.addi %arg7, %c1_i32_44 : i32
      %c0_45 = arith.constant 0 : index
      %51 = arith.index_cast %50 : i32 to index
      %c1_46 = arith.constant 1 : index
      %c0_47 = arith.constant 0 : index
      %52 = vector.load %arg1[%c0_45, %51, %c1_46, %c0_47] : memref<1x6x6x128xbf16, #tpu.memory_space<vmem>>, vector<1x1x4x128xbf16>
      %53 = vector.shape_cast %52 : vector<1x1x4x128xbf16> to vector<4x128xbf16>
      %c4 = arith.constant 4 : index
      %c0_48 = arith.constant 0 : index
      %c0_49 = arith.constant 0 : index
      %54 = vector.load %arg2[%c4, %c0_48, %c0_49] : memref<9x128x256xbf16, #tpu.memory_space<vmem>>, vector<1x128x256xbf16>
      %55 = vector.shape_cast %54 : vector<1x128x256xbf16> to vector<128x256xbf16>
      %cst_50 = arith.constant dense<0.000000e+00> : vector<4x256xf32>
      %56 = tpu.matmul %53, %55, %cst_50 {dimension_numbers = #tpu.dot_dimension_numbers<[1], [0], [0], [1], [0, 0, 1, 1], [], []>} : vector<4x128xbf16>, vector<128x256xbf16>, vector<4x256xf32> -> vector<4x256xf32>
      %57 = arith.addf %49, %56 : vector<4x256xf32>
      %c1_i32_51 = arith.constant 1 : i32
      %58 = arith.addi %arg7, %c1_i32_51 : i32
      %c0_52 = arith.constant 0 : index
      %59 = arith.index_cast %58 : i32 to index
      %c2_53 = arith.constant 2 : index
      %c0_54 = arith.constant 0 : index
      %60 = vector.load %arg1[%c0_52, %59, %c2_53, %c0_54] : memref<1x6x6x128xbf16, #tpu.memory_space<vmem>>, vector<1x1x4x128xbf16>
      %61 = vector.shape_cast %60 : vector<1x1x4x128xbf16> to vector<4x128xbf16>
      %c5 = arith.constant 5 : index
      %c0_55 = arith.constant 0 : index
      %c0_56 = arith.constant 0 : index
      %62 = vector.load %arg2[%c5, %c0_55, %c0_56] : memref<9x128x256xbf16, #tpu.memory_space<vmem>>, vector<1x128x256xbf16>
      %63 = vector.shape_cast %62 : vector<1x128x256xbf16> to vector<128x256xbf16>
      %cst_57 = arith.constant dense<0.000000e+00> : vector<4x256xf32>
      %64 = tpu.matmul %61, %63, %cst_57 {dimension_numbers = #tpu.dot_dimension_numbers<[1], [0], [0], [1], [0, 0, 1, 1], [], []>} : vector<4x128xbf16>, vector<128x256xbf16>, vector<4x256xf32> -> vector<4x256xf32>
      %65 = arith.addf %57, %64 : vector<4x256xf32>
      %c2_i32 = arith.constant 2 : i32
      %66 = arith.addi %arg7, %c2_i32 : i32
      %c0_58 = arith.constant 0 : index
      %67 = arith.index_cast %66 : i32 to index
      %c0_59 = arith.constant 0 : index
      %c0_60 = arith.constant 0 : index
      %68 = vector.load %arg1[%c0_58, %67, %c0_59, %c0_60] : memref<1x6x6x128xbf16, #tpu.memory_space<vmem>>, vector<1x1x4x128xbf16>
      %69 = vector.shape_cast %68 : vector<1x1x4x128xbf16> to vector<4x128xbf16>
      %c6 = arith.constant 6 : index
      %c0_61 = arith.constant 0 : index
      %c0_62 = arith.constant 0 : index
      %70 = vector.load %arg2[%c6, %c0_61, %c0_62] : memref<9x128x256xbf16, #tpu.memory_space<vmem>>, vector<1x128x256xbf16>
      %71 = vector.shape_cast %70 : vector<1x128x256xbf16> to vector<128x256xbf16>
      %cst_63 = arith.constant dense<0.000000e+00> : vector<4x256xf32>
      %72 = tpu.matmul %69, %71, %cst_63 {dimension_numbers = #tpu.dot_dimension_numbers<[1], [0], [0], [1], [0, 0, 1, 1], [], []>} : vector<4x128xbf16>, vector<128x256xbf16>, vector<4x256xf32> -> vector<4x256xf32>
      %73 = arith.addf %65, %72 : vector<4x256xf32>
      %c2_i32_64 = arith.constant 2 : i32
      %74 = arith.addi %arg7, %c2_i32_64 : i32
      %c0_65 = arith.constant 0 : index
      %75 = arith.index_cast %74 : i32 to index
      %c1_66 = arith.constant 1 : index
      %c0_67 = arith.constant 0 : index
      %76 = vector.load %arg1[%c0_65, %75, %c1_66, %c0_67] : memref<1x6x6x128xbf16, #tpu.memory_space<vmem>>, vector<1x1x4x128xbf16>
      %77 = vector.shape_cast %76 : vector<1x1x4x128xbf16> to vector<4x128xbf16>
      %c7 = arith.constant 7 : index
      %c0_68 = arith.constant 0 : index
      %c0_69 = arith.constant 0 : index
      %78 = vector.load %arg2[%c7, %c0_68, %c0_69] : memref<9x128x256xbf16, #tpu.memory_space<vmem>>, vector<1x128x256xbf16>
      %79 = vector.shape_cast %78 : vector<1x128x256xbf16> to vector<128x256xbf16>
      %cst_70 = arith.constant dense<0.000000e+00> : vector<4x256xf32>
      %80 = tpu.matmul %77, %79, %cst_70 {dimension_numbers = #tpu.dot_dimension_numbers<[1], [0], [0], [1], [0, 0, 1, 1], [], []>} : vector<4x128xbf16>, vector<128x256xbf16>, vector<4x256xf32> -> vector<4x256xf32>
      %81 = arith.addf %73, %80 : vector<4x256xf32>
      %c2_i32_71 = arith.constant 2 : i32
      %82 = arith.addi %arg7, %c2_i32_71 : i32
      %c0_72 = arith.constant 0 : index
      %83 = arith.index_cast %82 : i32 to index
      %c2_73 = arith.constant 2 : index
      %c0_74 = arith.constant 0 : index
      %84 = vector.load %arg1[%c0_72, %83, %c2_73, %c0_74] : memref<1x6x6x128xbf16, #tpu.memory_space<vmem>>, vector<1x1x4x128xbf16>
      %85 = vector.shape_cast %84 : vector<1x1x4x128xbf16> to vector<4x128xbf16>
      %c8 = arith.constant 8 : index
      %c0_75 = arith.constant 0 : index
      %c0_76 = arith.constant 0 : index
      %86 = vector.load %arg2[%c8, %c0_75, %c0_76] : memref<9x128x256xbf16, #tpu.memory_space<vmem>>, vector<1x128x256xbf16>
      %87 = vector.shape_cast %86 : vector<1x128x256xbf16> to vector<128x256xbf16>
      %cst_77 = arith.constant dense<0.000000e+00> : vector<4x256xf32>
      %88 = tpu.matmul %85, %87, %cst_77 {dimension_numbers = #tpu.dot_dimension_numbers<[1], [0], [0], [1], [0, 0, 1, 1], [], []>} : vector<4x128xbf16>, vector<128x256xbf16>, vector<4x256xf32> -> vector<4x256xf32>
      %89 = arith.addf %81, %88 : vector<4x256xf32>
      %90 = arith.index_cast %arg7 : i32 to index
      %c0_78 = arith.constant 0 : index
      %c0_79 = arith.constant 0 : index
      %91 = vector.load %arg6[%90, %c0_78, %c0_79] : memref<4x4x256xf32, #tpu.memory_space<vmem>>, vector<1x4x256xf32>
      %92 = vector.shape_cast %91 : vector<1x4x256xf32> to vector<4x256xf32>
      %93 = vector.shape_cast %89 : vector<4x256xf32> to vector<1x4x256xf32>
      tpu.vector_store %arg6[%90, %c0_78, %c0_79], %93 {strides = array<i32>} : memref<4x4x256xf32, #tpu.memory_space<vmem>>, vector<1x4x256xf32>,
    }
    %c4_i32_0 = arith.constant 4 : i32
    %c0 = arith.constant 0 : index
    %c0_1 = arith.constant 0 : index
    %c0_2 = arith.constant 0 : index
    %1 = vector.load %arg6[%c0, %c0_1, %c0_2] : memref<4x4x256xf32, #tpu.memory_space<vmem>>, vector<4x4x256xf32>
    %2 = arith.truncf %1 : vector<4x4x256xf32> to vector<4x4x256xbf16>
    %c0_3 = arith.constant 0 : index
    %c0_4 = arith.constant 0 : index
    %c0_5 = arith.constant 0 : index
    %c0_6 = arith.constant 0 : index
    %3 = vector.load %arg3[%c0_3, %c0_4, %c0_5, %c0_6] : memref<1x4x4x256xbf16, #tpu.memory_space<vmem>>, vector<1x4x4x256xbf16>
    %4 = vector.shape_cast %3 : vector<1x4x4x256xbf16> to vector<4x4x256xbf16>
    %5 = vector.shape_cast %2 : vector<4x4x256xbf16> to vector<1x4x4x256xbf16>
    tpu.vector_store %arg3[%c0_3, %c0_4, %c0_5, %c0_6], %5 {strides = array<i32>} : memref<1x4x4x256xbf16, #tpu.memory_space<vmem>>, vector<1x4x4x256xbf16>,
    %cst = arith.constant dense<0.000000e+00> : vector<256xf32>
    %6 = vector.multi_reduction <add>, %1, %cst [0, 1] : vector<4x4x256xf32> to vector<256xf32>
    %7 = vector.shape_cast %6 : vector<256xf32> to vector<1x1x256xf32>
    %8 = arith.mulf %1, %1 : vector<4x4x256xf32>
    %cst_7 = arith.constant dense<0.000000e+00> : vector<256xf32>
    %9 = vector.multi_reduction <add>, %8, %cst_7 [0, 1] : vector<4x4x256xf32> to vector<256xf32>
    %10 = vector.shape_cast %9 : vector<256xf32> to vector<1x1x256xf32>
    %11 = vector.shape_cast %7 : vector<1x1x256xf32> to vector<1x1x256xf32>
    %12 = vector.broadcast %11 : vector<1x1x256xf32> to vector<1x8x256xf32>
    %c0_8 = arith.constant 0 : index
    %c0_9 = arith.constant 0 : index
    %c0_10 = arith.constant 0 : index
    %13 = vector.load %arg4[%c0_8, %c0_9, %c0_10] : memref<1x8x256xf32, #tpu.memory_space<vmem>>, vector<1x8x256xf32>
    tpu.vector_store %arg4[%c0_8, %c0_9, %c0_10], %12 {strides = array<i32>} : memref<1x8x256xf32, #tpu.memory_space<vmem>>, vector<1x8x256xf32>,
    %14 = vector.shape_cast %10 : vector<1x1x256xf32> to vector<1x1x256xf32>
    %15 = vector.broadcast %14 : vector<1x1x256xf32> to vector<1x8x256xf32>
    %c0_11 = arith.constant 0 : index
    %c0_12 = arith.constant 0 : index
    %c0_13 = arith.constant 0 : index
    %16 = vector.load %arg5[%c0_11, %c0_12, %c0_13] : memref<1x8x256xf32, #tpu.memory_space<vmem>>, vector<1x8x256xf32>
    tpu.vector_store %arg5[%c0_11, %c0_12, %c0_13], %15 {strides = array<i32>} : memref<1x8x256xf32, #tpu.memory_space<vmem>>, vector<1x8x256xf32>,
    return
  }
  func.func @transform_0(%arg0: i32) -> (i32, i32, i32, i32) {
    %c0_i32 = arith.constant 0 : i32
    %c0_i32_0 = arith.constant 0 : i32
    %c0_i32_1 = arith.constant 0 : i32
    %c0_i32_2 = arith.constant 0 : i32
    return %arg0, %c0_i32, %c0_i32_0, %c0_i32_1 : i32, i32, i32, i32
  }
  func.func @transform_1(%arg0: i32) -> (i32, i32, i32) {
    %c0_i32 = arith.constant 0 : i32
    %c0_i32_0 = arith.constant 0 : i32
    %c0_i32_1 = arith.constant 0 : i32
    %c0_i32_2 = arith.constant 0 : i32
    return %c0_i32, %c0_i32_0, %c0_i32_1 : i32, i32, i32
  }
  func.func @transform_2(%arg0: i32) -> (i32, i32, i32, i32) {
    %c0_i32 = arith.constant 0 : i32
    %c0_i32_0 = arith.constant 0 : i32
    %c0_i32_1 = arith.constant 0 : i32
    %c0_i32_2 = arith.constant 0 : i32
    return %arg0, %c0_i32, %c0_i32_0, %c0_i32_1 : i32, i32, i32, i32
  }
  func.func @transform_3(%arg0: i32) -> (i32, i32, i32) {
    %c0_i32 = arith.constant 0 : i32
    %c0_i32_0 = arith.constant 0 : i32
    %c0_i32_1 = arith.constant 0 : i32
    return %arg0, %c0_i32, %c0_i32_0 : i32, i32, i32
  }
  func.func @transform_4(%arg0: i32) -> (i32, i32, i32) {
    %c0_i32 = arith.constant 0 : i32
    %c0_i32_0 = arith.constant 0 : i32
    %c0_i32_1 = arith.constant 0 : i32
    return %arg0, %c0_i32, %c0_i32_0 : i32, i32, i32
  }
}

</mosaic_0001>

<bundles_post_ra>
// kernel: tpu_custom_call.1
= control target key start
LH: loop header
LB: loop body
LE: loop exit
PB: predicated region body
PF: predicated region fallthrough
CT: control target
= control target key end

     0   :  { %10 = vsyncpa [#allocation4], 0  ;;  %s2910_s0 = inlined_call_operand.vmem [shape: bf16[2,6,6,128], index: 0, kind: input, shape index: {}]   ;;  %s2911_s1 = inlined_call_operand.hbm [shape: bf16[9,128,256], index: 1, kind: input, shape index: {}]   ;;  %s2912_s2 = inlined_call_operand.hbm [shape: bf16[2,4,4,256], index: 2, kind: output, shape index: {0}]   ;;  %s2913_s3 = inlined_call_operand.hbm [shape: f32[2,8,256], index: 3, kind: output, shape index: {1}]   ;;  %s2914_s4 = inlined_call_operand.hbm [shape: f32[2,8,256], index: 4, kind: output, shape index: {2}]  }
   0x1   :  { %11 = vsyncpa [#allocation5], 0 }
   0x2   :  { %13 = vsyncpa [#allocation5 + $0x1], 0 }
   0x3   :  { %14 = vsyncpa [#allocation8], 0 }
   0x4   :  { %16 = vsyncpa [#allocation8 + $0x1], 0  ;;  %s2633_s15 = smov 0   ;;  %s2635_s16 = smov 0  }
   0x5   :  { %s2637_s17 = smov 0   ;;  %s2639_s18 = smov 0  }
   0x6 LB: > { %s2654_s19 = sadd.s32 4294967295, %s2593_s18   ;;  %s1911_s20 = sadd.s32 4294967294, %s2593_s18   ;;  %s2593_s18 = sphi %s2639_s18, %s2930_s18   ;;  %s2589_s17 = sphi %s2637_s17, %s2929_s17   ;;  %s2585_s16 = sphi %s2635_s16, %s2928_s16   ;;  %s2581_s15 = sphi %s2633_s15, %s2927_s15  }
   0x7   : > { %s2658_s21 = sadd.s32 1, %s2593_s18   ;;  %s76_s22 = sadd.s32 1, %s2589_s17 }
   0x8   : > { %s73_s23 = ssub.s32 %s2593_s18, %s2658_s21  ;;  %p86_p0 = scmp.ne.s32.totalorder %s2589_s17, %s2585_s16 }
   0x9   : > { %p74_p1 = scmp.eq.s32.totalorder %s73_s23, 0  ;;  %p87_p2 = scmp.eq.s32.totalorder %s2654_s19, 1 }
   0xa   : > { %p92_p3 = scmp.ne.s32.totalorder %s2585_s16, %s2581_s15  ;;  %p93_p4 = scmp.eq.s32.totalorder %s1911_s20, 1 }
   0xb   : > { %s2671_s24 = scalar_select %p74_p1, %s2589_s17, %s76_s22  }
   0xc   : > { %p2673_p5 = por %p87_p2, %p86_p0  ;;  %p2677_p6 = por %p93_p4, %p92_p3 }
   0xd   : > { %p1912_p7 = scmp.ge.s32.totalorder %s2593_s18, 1  ;;  %p152_p8 = scmp.lt.s32.totalorder %s2593_s18, 3 }
   0xe   : > { %s2918_s25 = scalar_select %p2673_p5, 1, 0 }
   0xf   : > { %s2919_s26 = scalar_select %p2677_p6, 1, 0 }
  0x10   : > { %p2915_p9 = scmp.eq.s32.totalorder %s2654_s19, 0  ;;  %p2684_p10 = pnand %p1912_p7, %p152_p8 }
  0x11   : > { %s2599_s28 = smov [#allocation3]   ;;  %s2435_s7 = scalar_lea.hbm %s2911_s1, 18432 }
  0x12   : > { %s2920_s27 = scalar_select %p2684_p10, 1, 0 }
  0x13   : > { %s164_s29 = sshll.u32 %s2599_s28, 4  ;;  %p2146_p11 = pneg %p2684_p10  ;;  %s165_s29 = int_to_ptr.vmem [resolvable:$true] %s164_s29 }
  0x14   : > { %p2436_p13 = scmp.ne.s32.totalorder %s2911_s1, %s2435_s7  ;;  %p2442_p3 = scmp.lt.u32.totalorder %s2435_s7, %s2911_s1 }
  0x15   : > { %p2692_p12 = pnand %p2915_p9, %p2146_p11 }
  0x17   : > { %p2437_p0 = pneg %p2692_p12 }
  0x19   : > { %p2438_p1 = pnand %p2437_p0, %p2436_p13 }
  0x1b   : > { %p2439_p2 = pneg %p2438_p1 }
  0x1d   : > { %p2444_p4 = pnand %p2442_p3, %p2439_p2 }
  0x1f   : > { %2447 = shalt.err (!%p2444_p4)
}
  0x20   : > { %s2448_s12 = scalar_lea.vmem %s165_s29, 18432  ;;  %p2456_p9 = scmp.lt.s32.totalorder %s165_s29, %s165_s29 }
  0x21   : > { %p2449_p7 = scmp.ne.s32.totalorder %s165_s29, %s2448_s12  ;;  %p2457_p6 = scmp.lt.s32.totalorder %s2448_s12, %s2448_s12 }
  0x23   : > { %p2451_p8 = pnand %p2449_p7, %p2437_p0  ;;  %p2458_p5 = por %p2457_p6, %p2456_p9 }
  0x25   : > { %p2452_p11 = pneg %p2451_p8 }
  0x27   : > { %p2459_p10 = pnand %p2458_p5, %p2452_p11 }
  0x29   : > { %2462 = shalt.err (!%p2459_p10)
}
  0x2a   : > { %s2600_s13 = smov 128   ;;  %s2601_s14 = smov 8  }
  0x2b   : > { %2149 = dma.hbm_to_vmem [thread:$0]  (!%p2692_p12), %s2911_s1, 18432, %s165_s29, [#allocation4], %s2600_s13, %s2600_s13, %s2601_s14  }
  0x2c   : > { %p2922_p13 = scmp.ne.s32.totalorder %s2920_s27, 0 }
  0x2d   : > { %p2923_p1 = scmp.eq.s32.totalorder (!%p2922_p13), %s2654_s19, 0 }
  0x2e   : > { %188 = sbr.rel (%p2922_p13) target bundleno = 529 (0x211), region = 28 }
  0x35   : > { %2568 = dma.done.wait (%p2923_p1), [#allocation4], 18432   ;;  %p2924_p0 = pmov %p2923_p1 }
  0x36   : > { %s207_s28 = sand.u32 1, %s2585_s16   ;;  %p224_p5 = scmp.lt.s32.totalorder %s2654_s19, 1 }
  0x37   : > { %2570 = vsyncadd (%p2924_p0), [#allocation4], 4294948864  ;;  %s1917_s30 = sshll.u32 %s207_s28, 4  ;;  %s2734_s11 = smov 0  }
  0x38   : > { %s225_s5 = scalar_select %p224_p5, %s2654_s19, 1 }
  0x39   : > { %s2728_s8 = scalar_lea.vmem [#allocation6], %s1917_s30  ;;  %s2730_s9 = scalar_lea.vmem [#allocation7], %s1917_s30 }
  0x3a   : > { %s2135_s6 = smul.u32 24, %s225_s5  ;;  %s2732_s10 = scalar_lea.vmem [#allocation9], %s1917_s30 }
  0x3c   : > { %s2726_s27 = scalar_lea.vmem %s2910_s0, %s2135_s6 }
  0x3d LB: >> { %v2209_v0 = vld [vmem:[#allocation3 + $0x84] ss:$8 sps:$4 sm:$0xff]   ;;  %v2602_v2 = vmov 0   ;;  %v2213_v3 = vld [vmem:[#allocation3 + $0x80] ss:$8 sps:$4 sm:$0xff]   ;;  %s1921_s12 = sshll.u32 %s2597_s11, 2  ;;  %s2597_s11 = sphi %s2734_s11, %s235_s11  }
  0x3e   : >> { %v2211_v1 = vld [vmem:[#allocation3 + $0x204] ss:$8 sps:$4 sm:$0xff]   ;;  %396 = vmatprep.mubr.bf16.mxu1 %v2602_v2  ;;  %957 = vmatprep.mubr.bf16.mxu0 %v2602_v2  ;;  %v2214_v4 = vld [vmem:[#allocation3 + $0x200] ss:$8 sps:$4 sm:$0xff]   ;;  %v2215_v5 = vld [vmem:[#allocation3 + $0x94] ss:$8 sps:$4 sm:$0xff]   ;;  %s2743_s13 = scalar_lea.vmem %s2726_s27, %s1921_s12 }
  0x3f   : >> { %364 = vmatprep.subr.bf16.mxu1 %v2209_v0  ;;  %925 = vmatprep.subr.bf16.mxu0 %v2211_v1  ;;  %v2217_v6 = vld [vmem:[#allocation3 + $0x214] ss:$8 sps:$4 sm:$0xff]   ;;  %v2219_v7 = vld [vmem:[#allocation3 + $0x90] ss:$8 sps:$4 sm:$0xff]   ;;  %v2221_v9 = vld [vmem:[#allocation3 + $0xa4] ss:$8 sps:$4 sm:$0xff]  }
  0x40   : >> { %365 = vmatpush1.bf16.msra.mxu1 %v2213_v3  ;;  %926 = vmatpush1.bf16.msra.mxu0 %v2214_v4  ;;  %v2220_v8 = vld [vmem:[#allocation3 + $0x210] ss:$8 sps:$4 sm:$0xff]   ;;  %v2223_v10 = vld [vmem:[#allocation3 + $0x224] ss:$8 sps:$4 sm:$0xff]   ;;  %v2225_v11 = vld [vmem:[#allocation3 + $0xa0] ss:$8 sps:$4 sm:$0xff]  }
  0x41   : >> { %366 = vmatprep.subr.bf16.mxu1 %v2215_v5  ;;  %927 = vmatprep.subr.bf16.mxu0 %v2217_v6  ;;  %v2226_v12 = vld [vmem:[#allocation3 + $0x220] ss:$8 sps:$4 sm:$0xff]   ;;  %v2227_v13 = vld [vmem:[#allocation3 + $0xb4] ss:$8 sps:$4 sm:$0xff]   ;;  %v2231_v15 = vld [vmem:[#allocation3 + $0xb0] ss:$8 sps:$4 sm:$0xff]  }
  0x42   : >> { %v2229_v14 = vld [vmem:[#allocation3 + $0x234] ss:$8 sps:$4 sm:$0xff]   ;;  %v2232_v16 = vld [vmem:[#allocation3 + $0x230] ss:$8 sps:$4 sm:$0xff]   ;;  %v2233_v17 = vld [vmem:[#allocation3 + $0xc4] ss:$8 sps:$4 sm:$0xff]  }
  0x43   : >> { %v2235_v18 = vld [vmem:[#allocation3 + $0x244] ss:$8 sps:$4 sm:$0xff]   ;;  %v2237_v19 = vld [vmem:[#allocation3 + $0xc0] ss:$8 sps:$4 sm:$0xff]   ;;  %v2239_v21 = vld [vmem:[#allocation3 + $0xd4] ss:$8 sps:$4 sm:$0xff]  }
  0x44   : >> { %367 = vmatpush1.bf16.msra.mxu1 %v2219_v7  ;;  %928 = vmatpush1.bf16.msra.mxu0 %v2220_v8  ;;  %v2238_v20 = vld [vmem:[#allocation3 + $0x240] ss:$8 sps:$4 sm:$0xff]   ;;  %v2241_v22 = vld [vmem:[#allocation3 + $0x254] ss:$8 sps:$4 sm:$0xff]   ;;  %v2243_v23 = vld [vmem:[#allocation3 + $0xd0] ss:$8 sps:$4 sm:$0xff]  }
  0x45   : >> { %368 = vmatprep.subr.bf16.mxu1 %v2221_v9  ;;  %929 = vmatprep.subr.bf16.mxu0 %v2223_v10  ;;  %v2244_v24 = vld [vmem:[#allocation3 + $0x250] ss:$8 sps:$4 sm:$0xff]   ;;  %v2245_v25 = vld [vmem:[#allocation3 + $0xe4] ss:$8 sps:$4 sm:$0xff]   ;;  %v2249_v27 = vld [vmem:[#allocation3 + $0xe0] ss:$8 sps:$4 sm:$0xff]  }
  0x46   : >> { %v2247_v26 = vld [vmem:[#allocation3 + $0x264] ss:$8 sps:$4 sm:$0xff]   ;;  %v2250_v28 = vld [vmem:[#allocation3 + $0x260] ss:$8 sps:$4 sm:$0xff]   ;;  %v2251_v29 = vld [vmem:[#allocation3 + $0xf4] ss:$8 sps:$4 sm:$0xff]  }
  0x47   : >> { %v2253_v30 = vld [vmem:[#allocation3 + $0x274] ss:$8 sps:$4 sm:$0xff]   ;;  %v2263_v31 = vld [vmem:[%s2743_s13] ss:$0 sps:$4 sm:$0x77]   ;;  %s2101_s14 = sshll.u32 %s2597_s11, 3 }
  0x48   : >> { %369 = vmatpush1.bf16.msra.mxu1 %v2225_v11  ;;  %930 = vmatpush1.bf16.msra.mxu0 %v2226_v12  ;;  %v2264_v32 = vld [vmem:[%s2743_s13 + $0x4] ss:$0 sps:$4 sm:$0x77]   ;;  %v2255_v33 = vld [vmem:[#allocation3 + $0xf0] ss:$8 sps:$4 sm:$0xff]   ;;  %v279_v34 = vshll.u32 %v2263_v31, 16 }
  0x49   : >> { %370 = vmatprep.subr.bf16.mxu1 %v2227_v13  ;;  %931 = vmatprep.subr.bf16.mxu0 %v2229_v14  ;;  %v277_v35 = vshrl.u32 %v2263_v31, 16  ;;  %v838_v36 = vshrl.u32 %v2264_v32, 16  ;;  %v840_v37 = vshll.u32 %v2264_v32, 16  ;;  %v2256_v38 = vld [vmem:[#allocation3 + $0x270] ss:$8 sps:$4 sm:$0xff]   ;;  %s1562_s22 = scalar_lea.vmem [#allocation2], %s2101_s14 }
  0x4a   : >> { %v281_v39 = vrot.slane %v279_v34, 1  ;;  %v2259_v40 = vld [vmem:[#allocation3 + $0x4] ss:$8 sps:$4 sm:$0xff]   ;;  %v2257_v43 = vld [vmem:[#allocation3] ss:$8 sps:$4 sm:$0xff]   ;;  %s235_s11 = sadd.s32 1, %s2597_s11  }
  0x4b   : >> { %v2262_v41 = vld [vmem:[#allocation3 + $0x284] ss:$8 sps:$4 sm:$0xff]   ;;  %v842_v42 = vrot.slane %v840_v37, 1  ;;  %v2260_v46 = vld [vmem:[#allocation3 + $0x280] ss:$8 sps:$4 sm:$0xff]   ;;  %p232_p6 = scmp.ge.s32.totalorder %s235_s11, 4  }
  0x4c   : >> { %371 = vmatpush1.bf16.msra.mxu1 %v2231_v15  ;;  %932 = vmatpush1.bf16.msra.mxu0 %v2232_v16  ;;  %v282_v44 = vor.u32 %v281_v39, %v277_v35  ;;  %v2267_v47 = vld [vmem:[#allocation3 + $0x14] ss:$8 sps:$4 sm:$0xff]   ;;  %v2265_v49 = vld [vmem:[#allocation3 + $0x10] ss:$8 sps:$4 sm:$0xff]   ;;  %v2273_v51 = vld [vmem:[#allocation3 + $0x24] ss:$8 sps:$4 sm:$0xff]  }
  0x4d   : >> { %372 = vmatprep.subr.bf16.mxu1 %v2233_v17  ;;  %933 = vmatprep.subr.bf16.mxu0 %v2235_v18  ;;  %v843_v45 = vor.u32 %v842_v42, %v838_v36  ;;  %v2270_v48 = vld [vmem:[#allocation3 + $0x294] ss:$8 sps:$4 sm:$0xff]   ;;  %v2268_v50 = vld [vmem:[#allocation3 + $0x290] ss:$8 sps:$4 sm:$0xff]   ;;  %v2276_v52 = vld [vmem:[#allocation3 + $0x2a4] ss:$8 sps:$4 sm:$0xff]  }
  0x4e   : >> { %v2271_v53 = vld [vmem:[#allocation3 + $0x20] ss:$8 sps:$4 sm:$0xff]   ;;  %v2279_v55 = vld [vmem:[#allocation3 + $0x34] ss:$8 sps:$4 sm:$0xff]   ;;  %v2277_v57 = vld [vmem:[#allocation3 + $0x30] ss:$8 sps:$4 sm:$0xff]  }
  0x4f   : >> { %v2274_v54 = vld [vmem:[#allocation3 + $0x2a0] ss:$8 sps:$4 sm:$0xff]   ;;  %v2282_v56 = vld [vmem:[#allocation3 + $0x2b4] ss:$8 sps:$4 sm:$0xff]   ;;  %v2280_v58 = vld [vmem:[#allocation3 + $0x2b0] ss:$8 sps:$4 sm:$0xff]  }
  0x50   : >> { %373 = vmatpush1.bf16.msra.mxu1 %v2237_v19  ;;  %934 = vmatpush1.bf16.msra.mxu0 %v2238_v20  ;;  %v2285_v59 = vld [vmem:[#allocation3 + $0x44] ss:$8 sps:$4 sm:$0xff]   ;;  %v2283_v61 = vld [vmem:[#allocation3 + $0x40] ss:$8 sps:$4 sm:$0xff]   ;;  %v2291_v63 = vld [vmem:[#allocation3 + $0x54] ss:$8 sps:$4 sm:$0xff]  }
  0x51   : >> { %374 = vmatprep.subr.bf16.mxu1 %v2239_v21  ;;  %935 = vmatprep.subr.bf16.mxu0 %v2241_v22  ;;  %v2288_v60 = vld [vmem:[#allocation3 + $0x2c4] ss:$8 sps:$4 sm:$0xff]   ;;  %v2286_v62 = vld [vmem:[#allocation3 + $0x2c0] ss:$8 sps:$4 sm:$0xff]   ;;  %v2294_v0 = vld [vmem:[#allocation3 + $0x2d4] ss:$8 sps:$4 sm:$0xff]  }
  0x52   : >> { %v2289_v1 = vld [vmem:[#allocation3 + $0x50] ss:$8 sps:$4 sm:$0xff]   ;;  %v2297_v4 = vld [vmem:[#allocation3 + $0x64] ss:$8 sps:$4 sm:$0xff]   ;;  %v2295_v6 = vld [vmem:[#allocation3 + $0x60] ss:$8 sps:$4 sm:$0xff]  }
  0x53   : >> { %v2292_v3 = vld [vmem:[#allocation3 + $0x2d0] ss:$8 sps:$4 sm:$0xff]   ;;  %v2300_v5 = vld [vmem:[#allocation3 + $0x2e4] ss:$8 sps:$4 sm:$0xff]   ;;  %v2298_v7 = vld [vmem:[#allocation3 + $0x2e0] ss:$8 sps:$4 sm:$0xff]  }
  0x54   : >> { %375 = vmatpush1.bf16.msra.mxu1 %v2243_v23  ;;  %936 = vmatpush1.bf16.msra.mxu0 %v2244_v24  ;;  %v2303_v8 = vld [vmem:[#allocation3 + $0x74] ss:$8 sps:$4 sm:$0xff]   ;;  %v2301_v10 = vld [vmem:[#allocation3 + $0x70] ss:$8 sps:$4 sm:$0xff]   ;;  %v2309_v13 = vld [vmem:[#allocation3 + $0x104] ss:$8 sps:$4 sm:$0xff]  }
  0x55   : >> { %376 = vmatprep.subr.bf16.mxu1 %v2245_v25  ;;  %937 = vmatprep.subr.bf16.mxu0 %v2247_v26  ;;  %v2306_v9 = vld [vmem:[#allocation3 + $0x2f4] ss:$8 sps:$4 sm:$0xff]   ;;  %v2304_v11 = vld [vmem:[#allocation3 + $0x2f0] ss:$8 sps:$4 sm:$0xff]   ;;  %v2312_v14 = vld [vmem:[#allocation3 + $0x304] ss:$8 sps:$4 sm:$0xff]  }
  0x56   : >> { %v2313_v12 = vld [vmem:[%s2743_s13 + $0x4] ss:$0 sps:$4 sm:$0x66]   ;;  %v2307_v15 = vld [vmem:[#allocation3 + $0x100] ss:$8 sps:$4 sm:$0xff]   ;;  %vm1636_vm0 = vcmask (%p232_p6), 1043456  }
  0x57   : >> { %v2310_v16 = vld [vmem:[#allocation3 + $0x300] ss:$8 sps:$4 sm:$0xff]   ;;  %v989_v18 = vrot.slane %v2313_v12, 1  ;;  %v2316_v19 = vld [vmem:[#allocation3 + $0x114] ss:$8 sps:$4 sm:$0xff]   ;;  %s2766_s23 = sshll.u32 (%p232_p6), %s2654_s19, 8 }
  0x58   : >> { %377 = vmatpush1.bf16.msra.mxu1 %v2249_v27  ;;  %938 = vmatpush1.bf16.msra.mxu0 %v2250_v28  ;;  %v238_v17 = vld [vmem:[%s2743_s13] sm:$0x3]  ;;  %v2319_v20 = vld [vmem:[#allocation3 + $0x314] ss:$8 sps:$4 sm:$0xff]   ;;  %v2314_v21 = vld [vmem:[#allocation3 + $0x110] ss:$8 sps:$4 sm:$0xff]   ;;  %s2779_s6 = scalar_lea.hbm (%p232_p6), %s2912_s2, %s2766_s23 }
  0x59   : >> { %378 = vmatprep.subr.bf16.mxu1 %v2251_v29  ;;  %939 = vmatprep.subr.bf16.mxu0 %v2253_v30  ;;  %v2317_v22 = vld [vmem:[#allocation3 + $0x310] ss:$8 sps:$4 sm:$0xff]   ;;  %v2322_v23 = vld [vmem:[#allocation3 + $0x124] ss:$8 sps:$4 sm:$0xff]   ;;  %v2320_v25 = vld [vmem:[#allocation3 + $0x120] ss:$8 sps:$4 sm:$0xff]  }
  0x5a   : >> { %v2325_v24 = vld [vmem:[#allocation3 + $0x324] ss:$8 sps:$4 sm:$0xff]   ;;  %v2323_v26 = vld [vmem:[#allocation3 + $0x320] ss:$8 sps:$4 sm:$0xff]   ;;  %v2328_v27 = vld [vmem:[#allocation3 + $0x134] ss:$8 sps:$4 sm:$0xff]  }
  0x5b   : >> { %v2331_v28 = vld [vmem:[#allocation3 + $0x334] ss:$8 sps:$4 sm:$0xff]   ;;  %v2326_v29 = vld [vmem:[#allocation3 + $0x130] ss:$8 sps:$4 sm:$0xff]   ;;  %v2334_v31 = vld [vmem:[#allocation3 + $0x144] ss:$8 sps:$4 sm:$0xff]  }
  0x5c   : >> { %379 = vmatpush1.bf16.msra.mxu1 %v2255_v33  ;;  %940 = vmatpush1.bf16.msra.mxu0 %v2256_v38  ;;  %v2329_v30 = vld [vmem:[#allocation3 + $0x330] ss:$8 sps:$4 sm:$0xff]   ;;  %v2337_v32 = vld [vmem:[#allocation3 + $0x344] ss:$8 sps:$4 sm:$0xff]   ;;  %v2332_v33 = vld [vmem:[#allocation3 + $0x140] ss:$8 sps:$4 sm:$0xff]  }
  0x5d   : >> { %485 = vmatprep.subr.bf16.mxu1 %v2259_v40  ;;  %1071 = vmatprep.subr.bf16.mxu0 %v2262_v41  ;;  %v2335_v34 = vld [vmem:[#allocation3 + $0x340] ss:$8 sps:$4 sm:$0xff]   ;;  %v2340_v35 = vld [vmem:[#allocation3 + $0x154] ss:$8 sps:$4 sm:$0xff]   ;;  %v2338_v37 = vld [vmem:[#allocation3 + $0x150] ss:$8 sps:$4 sm:$0xff]  }
  0x5e   : >> { %v2343_v36 = vld [vmem:[#allocation3 + $0x354] ss:$8 sps:$4 sm:$0xff]   ;;  %v2341_v38 = vld [vmem:[#allocation3 + $0x350] ss:$8 sps:$4 sm:$0xff]   ;;  %v2346_v39 = vld [vmem:[#allocation3 + $0x164] ss:$8 sps:$4 sm:$0xff]  }
  0x5f   : >> { %397 = vmatmul.mubr.bf16.vlgmr.msra.gmra.mrb[0].mxu1 %v282_v44  ;;  %958 = vmatmul.mubr.bf16.vlgmr.msra.gmra.mrb[0].mxu0 %v843_v45  ;;  %v2349_v40 = vld [vmem:[#allocation3 + $0x364] ss:$8 sps:$4 sm:$0xff]   ;;  %v2344_v41 = vld [vmem:[#allocation3 + $0x160] ss:$8 sps:$4 sm:$0xff]   ;;  %v2355_v44 = vld [vmem:[#allocation3 + $0x374] ss:$8 sps:$4 sm:$0xff]  }
  0x60   : >> { %486 = vmatpush1.bf16.msra.mxu1 %v2257_v43  ;;  %1072 = vmatpush1.bf16.msra.mxu0 %v2260_v46  ;;  %v2347_v42 = vld [vmem:[#allocation3 + $0x360] ss:$8 sps:$4 sm:$0xff]   ;;  %v2352_v43 = vld [vmem:[#allocation3 + $0x174] ss:$8 sps:$4 sm:$0xff]   ;;  %v2350_v45 = vld [vmem:[#allocation3 + $0x170] ss:$8 sps:$4 sm:$0xff]  }
  0x61   : >> { %487 = vmatprep.subr.bf16.mxu1 %v2267_v47  ;;  %1073 = vmatprep.subr.bf16.mxu0 %v2270_v48  ;;  %v2362_v46 = vld [vmem:[%s2743_s13] ss:$0 sps:$4 sm:$0x66]   ;;  %v2353_v47 = vld [vmem:[#allocation3 + $0x370] ss:$8 sps:$4 sm:$0xff]   ;;  %s1733_s29 = sshll.u32 (%p232_p6), %s2728_s8, 4  ;;  %s2786_s29 = int_to_ptr.vmem [resolvable:$true] %s1733_s29 }
  0x62   : >> { %517 = vmatprep.mubr.bf16.mxu1 %v2602_v2  ;;  %1103 = vmatprep.mubr.bf16.mxu0 %v2602_v2  ;;  %v2358_v48 = vld [vmem:[#allocation3 + $0x184] ss:$8 sps:$4 sm:$0xff]   ;;  %s2799_s7 = scalar_lea.sflag (%p232_p6), [#allocation5], %s207_s28  ;;  %s2463_s27 = scalar_lea.vmem (%p232_p6), %s2786_s29, 256 }
  0x63   : >> { %v2395_v12 = vld [vmem:[#allocation3 + $0x1e4] ss:$8 sps:$4 sm:$0xff]   ;;  %p2464_p9 = scmp.ne.s32.totalorder (%p232_p6), %s2786_s29, %s2463_s27  ;;  %p2925_p10 = scmp.ne.s32.totalorder (%p232_p6), %s2918_s25, 0 }
  0x64   : >> { %488 = vmatpush1.bf16.msra.mxu1 %v2265_v49  ;;  %1074 = vmatpush1.bf16.msra.mxu0 %v2268_v50  ;;  %v2361_v49 = vld [vmem:[#allocation3 + $0x384] ss:$8 sps:$4 sm:$0xff]   ;;  %v2356_v50 = vld [vmem:[#allocation3 + $0x180] ss:$8 sps:$4 sm:$0xff]  }
  0x65   : >> { %489 = vmatprep.subr.bf16.mxu1 %v2273_v51  ;;  %1075 = vmatprep.subr.bf16.mxu0 %v2276_v52  ;;  %v547_v51 = vrot.slane %v2362_v46, 1  ;;  %v2359_v52 = vld [vmem:[#allocation3 + $0x380] ss:$8 sps:$4 sm:$0xff]   ;;  %p2465_p12 = pnand (%p232_p6), %p2464_p9, %p2925_p10 }
  0x67   : > { %p2466_p2 = pneg (%p232_p6), %p2465_p12 }
  0x68   : >> { %490 = vmatpush1.bf16.msra.mxu1 %v2271_v53  ;;  %1076 = vmatpush1.bf16.msra.mxu0 %v2274_v54  ;;  %v2027_v53 = vld [vmem:[%s2743_s13 + $0x8] sm:$0x3]  ;;  %v2365_v54 = vld [vmem:[#allocation3 + $0x194] ss:$8 sps:$4 sm:$0xff]  }
  0x69   : >> { %491 = vmatprep.subr.bf16.mxu1 %v2279_v55  ;;  %1077 = vmatprep.subr.bf16.mxu0 %v2282_v56  ;;  %v2368_v55 = vld [vmem:[#allocation3 + $0x394] ss:$8 sps:$4 sm:$0xff]   ;;  %v2363_v56 = vld [vmem:[#allocation3 + $0x190] ss:$8 sps:$4 sm:$0xff]  }
  0x6c   : >> { %492 = vmatpush1.bf16.msra.mxu1 %v2277_v57  ;;  %1078 = vmatpush1.bf16.msra.mxu0 %v2280_v58  ;;  %v2366_v57 = vld [vmem:[#allocation3 + $0x390] ss:$8 sps:$4 sm:$0xff]   ;;  %v2371_v58 = vld [vmem:[#allocation3 + $0x1a4] ss:$8 sps:$4 sm:$0xff]  }
  0x6d   : >> { %493 = vmatprep.subr.bf16.mxu1 %v2285_v59  ;;  %1079 = vmatprep.subr.bf16.mxu0 %v2288_v60  ;;  %v2374_v59 = vld [vmem:[#allocation3 + $0x3a4] ss:$8 sps:$4 sm:$0xff]   ;;  %v2369_v60 = vld [vmem:[#allocation3 + $0x1a0] ss:$8 sps:$4 sm:$0xff]  }
  0x70   : >> { %494 = vmatpush1.bf16.msra.mxu1 %v2283_v61  ;;  %1080 = vmatpush1.bf16.msra.mxu0 %v2286_v62  ;;  %v2372_v61 = vld [vmem:[#allocation3 + $0x3a0] ss:$8 sps:$4 sm:$0xff]   ;;  %v2377_v62 = vld [vmem:[#allocation3 + $0x1b4] ss:$8 sps:$4 sm:$0xff]  }
  0x71   : >> { %495 = vmatprep.subr.bf16.mxu1 %v2291_v63  ;;  %1081 = vmatprep.subr.bf16.mxu0 %v2294_v0  ;;  %v2380_v63 = vld [vmem:[#allocation3 + $0x3b4] ss:$8 sps:$4 sm:$0xff]   ;;  %v2375_v0 = vld [vmem:[#allocation3 + $0x1b0] ss:$8 sps:$4 sm:$0xff]  }
  0x74   : >> { %496 = vmatpush1.bf16.msra.mxu1 %v2289_v1  ;;  %1082 = vmatpush1.bf16.msra.mxu0 %v2292_v3  ;;  %v2378_v1 = vld [vmem:[#allocation3 + $0x3b0] ss:$8 sps:$4 sm:$0xff]   ;;  %v2383_v3 = vld [vmem:[#allocation3 + $0x1c4] ss:$8 sps:$4 sm:$0xff]  }
  0x75   : >> { %497 = vmatprep.subr.bf16.mxu1 %v2297_v4  ;;  %1083 = vmatprep.subr.bf16.mxu0 %v2300_v5  ;;  %v2386_v4 = vld [vmem:[#allocation3 + $0x3c4] ss:$8 sps:$4 sm:$0xff]   ;;  %v2381_v5 = vld [vmem:[#allocation3 + $0x1c0] ss:$8 sps:$4 sm:$0xff]  }
  0x78   : >> { %498 = vmatpush1.bf16.msra.mxu1 %v2295_v6  ;;  %1084 = vmatpush1.bf16.msra.mxu0 %v2298_v7  ;;  %v2384_v6 = vld [vmem:[#allocation3 + $0x3c0] ss:$8 sps:$4 sm:$0xff]   ;;  %v2389_v7 = vld [vmem:[#allocation3 + $0x1d4] ss:$8 sps:$4 sm:$0xff]  }
  0x79   : >> { %499 = vmatprep.subr.bf16.mxu1 %v2303_v8  ;;  %1085 = vmatprep.subr.bf16.mxu0 %v2306_v9  ;;  %v2392_v8 = vld [vmem:[#allocation3 + $0x3d4] ss:$8 sps:$4 sm:$0xff]   ;;  %v2408_v9 = vld [vmem:[%s2743_s13 + $0x8] ss:$0 sps:$4 sm:$0x77]  }
  0x7c   : >> { %500 = vmatpush1.bf16.msra.mxu1 %v2301_v10  ;;  %1086 = vmatpush1.bf16.msra.mxu0 %v2304_v11  ;;  %v2387_v10 = vld [vmem:[#allocation3 + $0x1d0] ss:$8 sps:$4 sm:$0xff]  }
  0x7d   : >> { %629 = vmatprep.subr.bf16.mxu1 %v2309_v13  ;;  %1215 = vmatprep.subr.bf16.mxu0 %v2312_v14  ;;  %v2390_v11 = vld [vmem:[#allocation3 + $0x3d0] ss:$8 sps:$4 sm:$0xff]   ;;  %v2398_v13 = vld [vmem:[#allocation3 + $0x3e4] ss:$8 sps:$4 sm:$0xff]   ;;  %v1282_v14 = vshll.u32 %v2408_v9, 16 }
  0x7f   : >> { %518 = vmatmul.mubr.bf16.vlgmr.msra.gmra.mrb[0].mxu1 %v238_v17  ;;  %1104 = vmatmul.mubr.bf16.vlgmr.msra.gmra.mrb[0].mxu0 %v989_v18  ;;  %v2401_v17 = vld [vmem:[#allocation3 + $0x1f4] ss:$8 sps:$4 sm:$0xff]  }
  0x80   : >> { %630 = vmatpush1.bf16.msra.mxu1 %v2307_v15  ;;  %1216 = vmatpush1.bf16.msra.mxu0 %v2310_v16  ;;  %v2393_v15 = vld [vmem:[#allocation3 + $0x1e0] ss:$8 sps:$4 sm:$0xff]   ;;  %v2404_v18 = vld [vmem:[#allocation3 + $0x3f4] ss:$8 sps:$4 sm:$0xff]  }
  0x81   : >> { %631 = vmatprep.subr.bf16.mxu1 %v2316_v19  ;;  %1217 = vmatprep.subr.bf16.mxu0 %v2319_v20  ;;  %v2396_v16 = vld [vmem:[#allocation3 + $0x3e0] ss:$8 sps:$4 sm:$0xff]   ;;  %v1280_v19 = vshrl.u32 %v2408_v9, 16  ;;  %v1284_v20 = vrot.slane %v1282_v14, 1 }
  0x82   : >> { %661 = vmatprep.mubr.bf16.mxu1 %v2602_v2  ;;  %1247 = vmatprep.mubr.bf16.mxu0 %v2602_v2 }
  0x84   : >> { %632 = vmatpush1.bf16.msra.mxu1 %v2314_v21  ;;  %1218 = vmatpush1.bf16.msra.mxu0 %v2317_v22  ;;  %v2399_v21 = vld [vmem:[#allocation3 + $0x1f0] ss:$8 sps:$4 sm:$0xff]  }
  0x85   : >> { %633 = vmatprep.subr.bf16.mxu1 %v2322_v23  ;;  %1219 = vmatprep.subr.bf16.mxu0 %v2325_v24  ;;  %v2402_v22 = vld [vmem:[#allocation3 + $0x3f0] ss:$8 sps:$4 sm:$0xff]   ;;  %v2407_v23 = vld [vmem:[#allocation3 + $0x404] ss:$8 sps:$4 sm:$0xff]   ;;  %v1285_v24 = vor.u32 %v1284_v20, %v1280_v19 }
  0x88   : >> { %634 = vmatpush1.bf16.msra.mxu1 %v2320_v25  ;;  %1220 = vmatpush1.bf16.msra.mxu0 %v2323_v26  ;;  %v1973_v25 = vld [vmem:[%s2743_s13 + $0x4] sm:$0x3]  ;;  %v2405_v26 = vld [vmem:[#allocation3 + $0x400] ss:$8 sps:$4 sm:$0xff]  }
  0x89   : >> { %635 = vmatprep.subr.bf16.mxu1 %v2328_v27  ;;  %1221 = vmatprep.subr.bf16.mxu0 %v2331_v28  ;;  %v2411_v27 = vld [vmem:[#allocation3 + $0x414] ss:$8 sps:$4 sm:$0xff]   ;;  %v2409_v28 = vld [vmem:[#allocation3 + $0x410] ss:$8 sps:$4 sm:$0xff]  }
  0x8c   : >> { %636 = vmatpush1.bf16.msra.mxu1 %v2326_v29  ;;  %1222 = vmatpush1.bf16.msra.mxu0 %v2329_v30  ;;  %v2414_v29 = vld [vmem:[#allocation3 + $0x424] ss:$8 sps:$4 sm:$0xff]   ;;  %v2412_v30 = vld [vmem:[#allocation3 + $0x420] ss:$8 sps:$4 sm:$0xff]  }
  0x8d   : >> { %637 = vmatprep.subr.bf16.mxu1 %v2334_v31  ;;  %1223 = vmatprep.subr.bf16.mxu0 %v2337_v32  ;;  %v2417_v31 = vld [vmem:[#allocation3 + $0x434] ss:$8 sps:$4 sm:$0xff]   ;;  %v2415_v32 = vld [vmem:[#allocation3 + $0x430] ss:$8 sps:$4 sm:$0xff]  }
  0x90   : >> { %638 = vmatpush1.bf16.msra.mxu1 %v2332_v33  ;;  %1224 = vmatpush1.bf16.msra.mxu0 %v2335_v34  ;;  %v2420_v33 = vld [vmem:[#allocation3 + $0x444] ss:$8 sps:$4 sm:$0xff]   ;;  %v2418_v34 = vld [vmem:[#allocation3 + $0x440] ss:$8 sps:$4 sm:$0xff]  }
  0x91   : >> { %639 = vmatprep.subr.bf16.mxu1 %v2340_v35  ;;  %1225 = vmatprep.subr.bf16.mxu0 %v2343_v36  ;;  %v2423_v35 = vld [vmem:[#allocation3 + $0x454] ss:$8 sps:$4 sm:$0xff]   ;;  %v2421_v36 = vld [vmem:[#allocation3 + $0x450] ss:$8 sps:$4 sm:$0xff]  }
  0x94   : >> { %640 = vmatpush1.bf16.msra.mxu1 %v2338_v37  ;;  %1226 = vmatpush1.bf16.msra.mxu0 %v2341_v38  ;;  %v2426_v37 = vld [vmem:[#allocation3 + $0x464] ss:$8 sps:$4 sm:$0xff]   ;;  %v2429_v38 = vld [vmem:[#allocation3 + $0x474] ss:$8 sps:$4 sm:$0xff]  }
  0x95   : >> { %641 = vmatprep.subr.bf16.mxu1 %v2346_v39  ;;  %1227 = vmatprep.subr.bf16.mxu0 %v2349_v40  ;;  %v2430_v39 = vld [vmem:[%s2743_s13 + $0x8] ss:$0 sps:$4 sm:$0x66]   ;;  %v2427_v40 = vld [vmem:[#allocation3 + $0x470] ss:$8 sps:$4 sm:$0xff]  }
  0x98   : >> { %642 = vmatpush1.bf16.msra.mxu1 %v2344_v41  ;;  %1228 = vmatpush1.bf16.msra.mxu0 %v2347_v42  ;;  %v1431_v41 = vrot.slane %v2430_v39, 1 }
  0x99   : >> { %643 = vmatprep.subr.bf16.mxu1 %v2352_v43  ;;  %1229 = vmatprep.subr.bf16.mxu0 %v2355_v44 }
  0x9c   : >> { %644 = vmatpush1.bf16.msra.mxu1 %v2350_v45  ;;  %1230 = vmatpush1.bf16.msra.mxu0 %v2353_v47 }
  0x9d   : >> { %773 = vmatprep.subr.bf16.mxu1 %v2358_v48  ;;  %1367 = vmatprep.subr.bf16.mxu0 %v2361_v49 }
  0x9f   : >> { %662 = vmatmul.mubr.bf16.vlgmr.msra.gmra.mrb[0].mxu1 %v547_v51  ;;  %1248 = vmatmul.mubr.bf16.vlgmr.msra.gmra.mrb[0].mxu0 %v2027_v53 }
  0xa0   : >> { %774 = vmatpush1.bf16.msra.mxu1 %v2356_v50  ;;  %1368 = vmatpush1.bf16.msra.mxu0 %v2359_v52 }
  0xa1   : >> { %775 = vmatprep.subr.bf16.mxu1 %v2365_v54  ;;  %1369 = vmatprep.subr.bf16.mxu0 %v2368_v55 }
  0xa2   : >> { %805 = vmatprep.mubr.bf16.mxu1 %v2602_v2  ;;  %1399 = vmatprep.mubr.bf16.mxu0 %v2602_v2 }
  0xa4   : >> { %776 = vmatpush1.bf16.msra.mxu1 %v2363_v56  ;;  %1370 = vmatpush1.bf16.msra.mxu0 %v2366_v57 }
  0xa5   : >> { %777 = vmatprep.subr.bf16.mxu1 %v2371_v58  ;;  %1371 = vmatprep.subr.bf16.mxu0 %v2374_v59 }
  0xa8   : >> { %778 = vmatpush1.bf16.msra.mxu1 %v2369_v60  ;;  %1372 = vmatpush1.bf16.msra.mxu0 %v2372_v61 }
  0xa9   : >> { %779 = vmatprep.subr.bf16.mxu1 %v2377_v62  ;;  %1373 = vmatprep.subr.bf16.mxu0 %v2380_v63 }
  0xac   : >> { %780 = vmatpush1.bf16.msra.mxu1 %v2375_v0  ;;  %1374 = vmatpush1.bf16.msra.mxu0 %v2378_v1 }
  0xad   : >> { %781 = vmatprep.subr.bf16.mxu1 %v2383_v3  ;;  %1375 = vmatprep.subr.bf16.mxu0 %v2386_v4 }
  0xb0   : >> { %782 = vmatpush1.bf16.msra.mxu1 %v2381_v5  ;;  %1376 = vmatpush1.bf16.msra.mxu0 %v2384_v6 }
  0xb1   : >> { %783 = vmatprep.subr.bf16.mxu1 %v2389_v7  ;;  %1377 = vmatprep.subr.bf16.mxu0 %v2392_v8 }
  0xb4   : >> { %784 = vmatpush1.bf16.msra.mxu1 %v2387_v10  ;;  %1378 = vmatpush1.bf16.msra.mxu0 %v2390_v11 }
  0xb5   : >> { %785 = vmatprep.subr.bf16.mxu1 %v2395_v12  ;;  %1379 = vmatprep.subr.bf16.mxu0 %v2398_v13 }
  0xb8   : >> { %786 = vmatpush1.bf16.msra.mxu1 %v2393_v15  ;;  %1380 = vmatpush1.bf16.msra.mxu0 %v2396_v16 }
  0xb9   : >> { %787 = vmatprep.subr.bf16.mxu1 %v2401_v17  ;;  %1381 = vmatprep.subr.bf16.mxu0 %v2404_v18 }
  0xbc   : >> { %788 = vmatpush1.bf16.msra.mxu1 %v2399_v21  ;;  %1382 = vmatpush1.bf16.msra.mxu0 %v2402_v22 }
  0xbd   : >> { %1513 = vmatprep.subr.bf16.mxu0 %v2407_v23 }
  0xbf   : >> { %806 = vmatmul.mubr.bf16.vlgmr.msra.gmra.mrb[0].mxu1 %v1973_v25  ;;  %1400 = vmatmul.mubr.bf16.vlgmr.msra.gmra.mrb[0].mxu0 %v1285_v24 }
  0xc0   : >> { %1514 = vmatpush1.bf16.msra.mxu0 %v2405_v26  ;;  %1545 = vmatprep.mubr.bf16.mxu0 %v2602_v2  ;;  %v2424_v2 = vld [vmem:[#allocation3 + $0x460] ss:$8 sps:$4 sm:$0xff]  }
  0xc1   : >> { %1515 = vmatprep.subr.bf16.mxu0 %v2411_v27 }
  0xc4   : >> { %1516 = vmatpush1.bf16.msra.mxu0 %v2409_v28 }
  0xc5   : >> { %1517 = vmatprep.subr.bf16.mxu0 %v2414_v29 }
  0xc8   : >> { %1518 = vmatpush1.bf16.msra.mxu0 %v2412_v30 }
  0xc9   : >> { %1519 = vmatprep.subr.bf16.mxu0 %v2417_v31 }
  0xcc   : >> { %1520 = vmatpush1.bf16.msra.mxu0 %v2415_v32 }
  0xcd   : >> { %1521 = vmatprep.subr.bf16.mxu0 %v2420_v33 }
  0xd0   : >> { %1522 = vmatpush1.bf16.msra.mxu0 %v2418_v34 }
  0xd1   : >> { %1523 = vmatprep.subr.bf16.mxu0 %v2423_v35 }
  0xd4   : >> { %1524 = vmatpush1.bf16.msra.mxu0 %v2421_v36 }
  0xd5   : >> { %1525 = vmatprep.subr.bf16.mxu0 %v2426_v37 }
  0xd8   : >> { %1526 = vmatpush1.bf16.msra.mxu0 %v2424_v2 }
  0xd9   : >> { %1527 = vmatprep.subr.bf16.mxu0 %v2429_v38 }
  0xdc   : >> { %1528 = vmatpush1.bf16.msra.mxu0 %v2427_v40 }
  0xdf   : >> { %1546 = vmatmul.mubr.bf16.vlgmr.msra.gmra.mrb[0].mxu0 %v1431_v41 }
 0x192   : >> { %v807_v42 = vpop.f32.mrb[0].mxu1 }
 0x193   : >> { %v809_v43 = vpop.f32.mrb[1].mxu1 }
 0x194   : >> { %v811_v44 = vpop.f32.mrb[2].mxu1 }
 0x195   : >> { %v812_v45 = vpop.f32.mrb[3].mxu1 }
 0x1b2   : >> { %v1547_v46 = vpop.f32.mrb[0].mxu0  ;;  %234 = sbr.rel (!%p232_p6) target bundleno = 61 (0x3d), region = 119 }
 0x1b3   : >> { %v2105_v47 = vadd.f32 %v1547_v46, %v807_v42  ;;  %v1549_v48 = vpop.f32.mrb[1].mxu0 }
 0x1b4   : >> { %v2106_v49 = vadd.f32 %v1549_v48, %v809_v43  ;;  %v1551_v50 = vpop.f32.mrb[2].mxu0 }
 0x1b5   : >> { %v1552_v51 = vpop.f32.mrb[3].mxu0 }
 0x1b6   : >> { %v1558_v52 = vcombine.low %v2105_v47, %v2106_v49 }
 0x1b8   : >> { %1563 = vst [vmem:[%s1562_s22] sm:$0xff] %v1558_v52 }
 0x1bf   : > { %v1564_v53 = vld [vmem:[#allocation2] sm:$0xff]  ;;  %v1565_v54 = vld [vmem:[#allocation2 + $0x8] sm:$0xff]  ;;  %v1566_v55 = vld [vmem:[#allocation2 + $0x10] sm:$0xff] }
 0x1c0   : > { %v1567_v56 = vld [vmem:[#allocation2 + $0x18] sm:$0xff]  ;;  %v1637_v57 = vsel %vm1636_vm0, %v1564_v53, 0.0  ;;  %v1638_v58 = vsel %vm1636_vm0, %v1565_v54, 0.0  ;;  %v1640_v59 = vsel %vm1636_vm0, %v1566_v55, 0.0  ;;  %v1572_v60 = vcombine.high %v1564_v53, %v1564_v53 }
 0x1c1   : > { %v1639_v61 = vadd.f32 %v1638_v58, %v1637_v57  ;;  %v1642_v62 = vsel %vm1636_vm0, %v1567_v56, 0.0  ;;  %v1573_v63 = vcombine.high %v1565_v54, %v1565_v54  ;;  %v1574_v0 = vcombine.high %v1566_v55, %v1566_v55 }
 0x1c2   : > { %v1575_v1 = vcombine.high %v1567_v56, %v1567_v56  ;;  %v1650_v3 = vsel %vm1636_vm0, %v1572_v60, 0.0  ;;  %v2082_v4 = vpack.c.bf16 %v1572_v60, %v1564_v53  ;;  %v2773_v5 = vmul.f32 %v1564_v53, %v1564_v53 }
 0x1c3   : > { %v1641_v6 = vadd.f32 %v1640_v59, %v1639_v61  ;;  %v1651_v7 = vsel %vm1636_vm0, %v1573_v63, 0.0  ;;  %v1653_v8 = vsel %vm1636_vm0, %v1574_v0, 0.0  ;;  %v2083_v9 = vpack.c.bf16 %v1573_v63, %v1565_v54 }
 0x1c4   : > { %v1652_v10 = vadd.f32 %v1651_v7, %v1650_v3  ;;  %v1655_v11 = vsel %vm1636_vm0, %v1575_v1, 0.0  ;;  %2086 = vst.sshfl [vmem:[%s2728_s8] sm:$0x33 pattern:$0x76325410] %v2082_v4  ;;  %v2084_v12 = vpack.c.bf16 %v1574_v0, %v1566_v55  ;;  %v2085_v13 = vpack.c.bf16 %v1575_v1, %v1567_v56 }
 0x1c5   : > { %v1643_v14 = vadd.f32 %v1642_v62, %v1641_v6  ;;  %2087 = vst.sshfl [vmem:[%s2728_s8 + $0x4] sm:$0x33 pattern:$0x76325410] %v2083_v9  ;;  %v1664_v15 = vmul.f32 %v1565_v54, %v1565_v54  ;;  %v1665_v16 = vmul.f32 %v1566_v55, %v1566_v55  ;;  %v1666_v17 = vmul.f32 %v1567_v56, %v1567_v56 }
 0x1c6   : > { %v1654_v18 = vadd.f32 %v1653_v8, %v1652_v10  ;;  %2088 = vst.sshfl [vmem:[%s2728_s8 + $0x8] sm:$0x33 pattern:$0x76325410] %v2084_v12  ;;  %v1679_v19 = vsel %vm1636_vm0, %v2773_v5, 0.0  ;;  %v1671_v20 = vcombine.high %v2773_v5, %v2773_v5 }
 0x1c7   : > { %2089 = vst.sshfl [vmem:[%s2728_s8 + $0xc] sm:$0x33 pattern:$0x76325410] %v2085_v13  ;;  %v1644_v21 = vrot.slane %v1643_v14, 4  ;;  %v1680_v22 = vsel %vm1636_vm0, %v1664_v15, 0.0 }
 0x1c8   : > { %v1682_v23 = vsel %vm1636_vm0, %v1665_v16, 0.0  ;;  %s2603_s8 = smov [#allocation6]  }
 0x1c9   : > { %s2467_s11 = sshll.u32 %s2603_s8, 4  ;;  %s2468_s11 = int_to_ptr.vmem [resolvable:$false] %s2467_s11 }
 0x1ca   : > { %s2469_s12 = scalar_lea.vmem %s2468_s11, 512  ;;  %p2470_p3 = scmp.lt.s32.totalorder %s2786_s29, %s2468_s11 }
 0x1cb   : > { %p2471_p4 = scmp.lt.s32.totalorder %s2469_s12, %s2463_s27 }
 0x1cd   : > { %p2472_p7 = por %p2471_p4, %p2470_p3 }
 0x1cf   : > { %p2473_p8 = pnand %p2472_p7, %p2466_p2 }
 0x1d1   : > { %2476 = shalt.err (!%p2473_p8)
}
 0x1d2   : > { %s2477_s28 = scalar_lea.hbm %s2779_s6, 256  ;;  %s2481_s22 = scalar_lea.hbm %s2912_s2, 512 }
 0x1d3   : > { %p2478_p11 = scmp.ne.s32.totalorder %s2779_s6, %s2477_s28  ;;  %p2482_p0 = scmp.lt.u32.totalorder %s2779_s6, %s2912_s2 }
 0x1d4   : > { %p2483_p5 = scmp.lt.u32.totalorder %s2481_s22, %s2477_s28  ;;  %p2485_p9 = scmp.lt.u32.totalorder %s2477_s28, %s2779_s6 }
 0x1d5   : > { %p2479_p13 = pnand %p2478_p11, %p2925_p10 }
 0x1d6   : > { %p2484_p6 = por %p2483_p5, %p2482_p0 }
 0x1d7   : > { %p2480_p1 = pneg %p2479_p13 }
 0x1d8   : > { %p2486_p12 = por %p2485_p9, %p2484_p6 }
 0x1da   : > { %p2487_p2 = pnand %p2486_p12, %p2480_p1 }
 0x1dc   : > { %2490 = shalt.err (!%p2487_p2)
}
 0x1dd   : > { %s2604_s27 = smov 64   ;;  %s2605_s8 = smov 4   ;;  %v1656_v24 = vadd.f32 %v1655_v11, %v1654_v18  ;;  %v1681_v25 = vadd.f32 %v1680_v22, %v1679_v19  ;;  %v1672_v26 = vcombine.high %v1664_v15, %v1664_v15  ;;  %v1673_v27 = vcombine.high %v1665_v16, %v1665_v16 }
 0x1de   : > { %2140 = dma.vmem_to_hbm [thread:$0]  (%p2925_p10), %s2786_s29, 256, %s2779_s6, %s2799_s7, %s2604_s27, %s2604_s27, %s2605_s8   ;;  %v1645_v28 = vadd.f32 %v1644_v21, %v1643_v14  ;;  %v1684_v29 = vsel %vm1636_vm0, %v1666_v17, 0.0  ;;  %v1674_v30 = vcombine.high %v1666_v17, %v1666_v17  ;;  %v1692_v31 = vsel %vm1636_vm0, %v1671_v20, 0.0 }
 0x1df   : > { %v1657_v32 = vrot.slane %v1656_v24, 4  ;;  %v1683_v33 = vadd.f32 %v1682_v23, %v1681_v25  ;;  %v1693_v34 = vsel %vm1636_vm0, %v1672_v26, 0.0  ;;  %v1695_v35 = vsel %vm1636_vm0, %v1673_v27, 0.0  ;;  %s1714_s6 = sand.u32 1, %s2654_s19   ;;  %s1750_s29 = sshll.u32 %s2730_s9, 4  ;;  %s2837_s29 = int_to_ptr.vmem [resolvable:$true] %s1750_s29 }
 0x1e0   : > { %v1646_v36 = vrot.slane %v1645_v28, 2  ;;  %v1694_v37 = vadd.f32 %v1693_v34, %v1692_v31  ;;  %v1697_v39 = vsel %vm1636_vm0, %v1674_v30, 0.0  ;;  %s2835_s12 = scalar_lea.hbm %s2913_s3, %s2766_s23  ;;  %s2840_s19 = scalar_lea.sflag [#allocation8], %s1714_s6 }
 0x1e1   : > { %v1658_v2 = vadd.f32 %v1657_v32, %v1656_v24  ;;  %v1685_v38 = vadd.f32 %v1684_v29, %v1683_v33  ;;  %s2491_s28 = scalar_lea.vmem %s2837_s29, 256  ;;  %s2606_s13 = smov [#allocation7]  }
 0x1e2   : > { %v1647_v40 = vadd.f32 %v1646_v36, %v1645_v28  ;;  %v1696_v41 = vadd.f32 %v1695_v35, %v1694_v37  ;;  %p2492_p3 = scmp.ne.s32.totalorder %s2837_s29, %s2491_s28  ;;  %s2495_s14 = sshll.u32 %s2606_s13, 4  ;;  %s2496_s14 = int_to_ptr.vmem [resolvable:$false] %s2495_s14 }
 0x1e3   : > { %v1659_v42 = vrot.slane %v1658_v2, 2  ;;  %v1686_v43 = vrot.slane %v1685_v38, 4  ;;  %s2497_s22 = scalar_lea.vmem %s2496_s14, 512  ;;  %p2498_p8 = scmp.lt.s32.totalorder %s2837_s29, %s2496_s14 }
 0x1e4   : > { %v1648_v44 = vrot.slane %v1647_v40, 1  ;;  %v1698_v45 = vadd.f32 %v1697_v39, %v1696_v41  ;;  %p2493_p4 = pnand %p2492_p3, %p2925_p10  ;;  %p2499_p11 = scmp.lt.s32.totalorder %s2497_s22, %s2491_s28 }
 0x1e5   : > { %v1660_v46 = vadd.f32 %v1659_v42, %v1658_v2  ;;  %v1687_v47 = vadd.f32 %v1686_v43, %v1685_v38 }
 0x1e6   : > { %v1649_v48 = vadd.f32 %v1648_v44, %v1647_v40  ;;  %v1699_v49 = vrot.slane %v1698_v45, 4  ;;  %p2494_p7 = pneg %p2493_p4  ;;  %p2500_p13 = por %p2499_p11, %p2498_p8 }
 0x1e7   : > { %v1661_v50 = vrot.slane %v1660_v46, 1  ;;  %v1688_v51 = vrot.slane %v1687_v47, 2 }
 0x1e8   : > { %1705 = vst [vmem:[%s2730_s9] sm:$0xff] %v1649_v48  ;;  %v1700_v52 = vadd.f32 %v1699_v49, %v1698_v45  ;;  %p2501_p1 = pnand %p2500_p13, %p2494_p7 }
 0x1e9   : > { %v1662_v53 = vadd.f32 %v1661_v50, %v1660_v46  ;;  %v1689_v54 = vadd.f32 %v1688_v51, %v1687_v47 }
 0x1ea   : > { %v1701_v55 = vrot.slane %v1700_v52, 2 }
 0x1eb   : > { %1706 = vst [vmem:[%s2730_s9 + $0x8] sm:$0xff] %v1662_v53  ;;  %v1690_v56 = vrot.slane %v1689_v54, 1 }
 0x1ec   : > { %v1702_v57 = vadd.f32 %v1701_v55, %v1700_v52 }
 0x1ed   : > { %2504 = shalt.err (!%p2501_p1)
}
 0x1ee   : > { %s2505_s9 = scalar_lea.hbm %s2835_s12, 256  ;;  %s2509_s27 = scalar_lea.hbm %s2913_s3, 512 }
 0x1ef   : > { %p2506_p0 = scmp.ne.s32.totalorder %s2835_s12, %s2505_s9  ;;  %p2510_p9 = scmp.lt.u32.totalorder %s2835_s12, %s2913_s3 }
 0x1f0   : > { %p2511_p12 = scmp.lt.u32.totalorder %s2509_s27, %s2505_s9  ;;  %p2513_p3 = scmp.lt.u32.totalorder %s2505_s9, %s2835_s12 }
 0x1f1   : > { %p2507_p5 = pnand %p2506_p0, %p2925_p10 }
 0x1f2   : > { %p2512_p2 = por %p2511_p12, %p2510_p9 }
 0x1f3   : > { %p2508_p6 = pneg %p2507_p5 }
 0x1f4   : > { %p2514_p4 = por %p2513_p3, %p2512_p2 }
 0x1f6   : > { %p2515_p7 = pnand %p2514_p4, %p2508_p6 }
 0x1f8   : > { %2518 = shalt.err (!%p2515_p7)
}
 0x1f9   : > { %2141 = dma.vmem_to_hbm [thread:$0]  (%p2925_p10), %s2837_s29, 256, %s2835_s12, %s2840_s19   ;;  %v1691_v58 = vadd.f32 %v1690_v56, %v1689_v54  ;;  %v1703_v59 = vrot.slane %v1702_v57, 1 }
 0x1fa   : > { %s1764_s7 = sshll.u32 %s2732_s10, 4  ;;  %s2870_s13 = scalar_lea.hbm %s2914_s4, %s2766_s23  ;;  %s1765_s7 = int_to_ptr.vmem [resolvable:$true] %s1764_s7 }
 0x1fb   : > { %1707 = vst [vmem:[%s2732_s10] sm:$0xff] %v1691_v58  ;;  %v1704_v60 = vadd.f32 %v1703_v59, %v1702_v57  ;;  %s2519_s14 = scalar_lea.vmem %s1765_s7, 256  ;;  %s2607_s22 = smov [#allocation9]  }
 0x1fc   : > { %p2520_p8 = scmp.ne.s32.totalorder %s1765_s7, %s2519_s14  ;;  %s2523_s9 = sshll.u32 %s2607_s22, 4  ;;  %s2524_s9 = int_to_ptr.vmem [resolvable:$false] %s2523_s9 }
 0x1fd   : > { %1708 = vst [vmem:[%s2732_s10 + $0x8] sm:$0xff] %v1704_v60  ;;  %s2525_s29 = scalar_lea.vmem %s2524_s9, 512  ;;  %p2526_p1 = scmp.lt.s32.totalorder %s1765_s7, %s2524_s9 }
 0x1fe   : > { %p2521_p11 = pnand %p2520_p8, %p2925_p10  ;;  %p2527_p0 = scmp.lt.s32.totalorder %s2525_s29, %s2519_s14 }
 0x200   : > { %p2522_p13 = pneg %p2521_p11  ;;  %p2528_p5 = por %p2527_p0, %p2526_p1 }
 0x202   : > { %p2529_p6 = pnand %p2528_p5, %p2522_p13 }
 0x204   : > { %2532 = shalt.err (!%p2529_p6)
}
 0x205   : > { %s2533_s10 = scalar_lea.hbm %s2870_s13, 256  ;;  %s2537_s30 = scalar_lea.hbm %s2914_s4, 512 }
 0x206   : > { %p2534_p9 = scmp.ne.s32.totalorder %s2870_s13, %s2533_s10  ;;  %p2538_p3 = scmp.lt.u32.totalorder %s2870_s13, %s2914_s4 }
 0x207   : > { %p2539_p4 = scmp.lt.u32.totalorder %s2537_s30, %s2533_s10  ;;  %p2541_p8 = scmp.lt.u32.totalorder %s2533_s10, %s2870_s13 }
 0x208   : > { %p2535_p12 = pnand %p2534_p9, %p2925_p10 }
 0x209   : > { %p2540_p7 = por %p2539_p4, %p2538_p3 }
 0x20a   : > { %p2536_p2 = pneg %p2535_p12 }
 0x20b   : > { %p2542_p11 = por %p2541_p8, %p2540_p7 }
 0x20d   : > { %p2543_p13 = pnand %p2542_p11, %p2536_p2 }
 0x20f   : > { %2546 = shalt.err (!%p2543_p13)
}
 0x210   : > { %2142 = dma.vmem_to_hbm [thread:$0]  (%p2925_p10), %s1765_s7, 256, %s2870_s13, %s2840_s19  }
 0x211 PF: > { %p2162_p1 = scmp.ge.s32.totalorder %s2593_s18, 2  ;;  %s1776_s8 = sand.u32 1, %s2581_s15  }
 0x212   : > { %p2926_p0 = scmp.ne.s32.totalorder %s2919_s26, 0  ;;  %s1777_s6 = scalar_lea.sflag [#allocation5], %s1776_s8 }
 0x214   : > { %p2151_p5 = pnand %p2162_p1, %p2926_p0 }
 0x216   : > { %2572 = dma.done.wait (!%p2151_p5), %s1777_s6, 256  }
 0x217   : > { %2574 = vsyncadd (!%p2151_p5), %s1777_s6, 4294967040  ;;  %s1785_s11 = sand.u32 1, %s1911_s20  }
 0x218   : > { %s1786_s28 = scalar_lea.sflag [#allocation8], %s1785_s11 }
 0x219   : > { %2576 = dma.done.wait (!%p2151_p5), %s1786_s28, 512  }
 0x21a   : > { %2578 = vsyncadd (!%p2151_p5), %s1786_s28, 4294966784  ;;  %p19_p10 = scmp.ge.s32.totalorder %s2658_s21, 4   ;;  %s2927_s15 = smov %s2585_s16 }
 0x21b   : > { %s2928_s16 = smov %s2589_s17  ;;  %s2929_s17 = smov %s2671_s24 }
 0x21c   : > { %s2930_s18 = smov %s2658_s21  ;;  %21 = sbr.rel (!%p19_p10) target bundleno = 6 (0x6), region = 130 }
 0x223   :  { %1800 = vsyncpa [#allocation4], 1 }
 0x224   :  { %1802 = vsyncpa [#allocation4 + $0x1], 1 }
 0x225   :  { %1803 = vsyncpa [#allocation5], 1 }
 0x226   :  { %1805 = vsyncpa [#allocation5 + $0x1], 1 }
 0x227   :  { %1806 = vsyncpa [#allocation8], 1 }
 0x228   :  { %1808 = vsyncpa [#allocation8 + $0x1], 1 }

</bundles_post_ra>
